<compile_context>
chip_gen: v7x
topology: tpu7x:2x2x1
jax: 0.10.0
libtpu: 0.0.40
codegen_flags: <defaults>
</compile_context>

<pallas_src>
import functools

import jax
import jax.numpy as jnp
from jax import lax
from jax.experimental import pallas as pl
from jax.experimental.pallas import tpu as pltpu

LANE_PAD = 128  # every feature dim is zero-padded to this many lanes


# ---------------------------------------------------------------------------
# Fused Pallas kernel: per-graph, L x (GATConv + ReLU) followed by Linear
# ---------------------------------------------------------------------------
def _gcnnet_kernel(x_ref, mask_ref, w_ref, att_ref, b_ref, out_ref, *,
                   fold_cols):
    """
    x_ref    : (N, P)       f32   node features of one graph (zero-padded)
    mask_ref : (N, N)       f32   additive mask: 0.0 where edge j->i, -1e30 else
    w_ref    : (L+1, P, P)  bf16  GAT weights (att_dst folded into padded col
                                  `fold_cols[l]` where possible); layer L = fc
    att_ref  : (L, 2, P)    f32   row 0 = att_dst (used only if not folded),
                                  row 1 = att_src
    b_ref    : (L+1, 1, P)  f32   biases; index L = fc bias
    out_ref  : (N, P)       f32   padded output (caller slices [:, :out_dim])
    fold_cols: static tuple, per GAT layer: padded column holding W@att_dst,
               or -1 if the attention matmul is needed.
    """
    num_gat = len(fold_cols)
    mask = mask_ref[...]                              # (N, N) additive bias
    h = x_ref[...]                                    # running hidden, f32

    for l in range(num_gat):                          # static unroll (L small)
        w_l = w_ref[l]                                # (P, P) bf16
        # h @ W on the MXU (bf16 inputs, f32 accumulate)
        hw = jnp.dot(h.astype(jnp.bfloat16), w_l,
                     preferred_element_type=jnp.float32)          # (N, P) f32

        att_l = att_ref[l]                            # (2, P) f32
        # source logits directly as a (1, N) row — NT contraction on the
        # feature axis, no (N,1)->(1,N) XLU transpose.
        a_src = lax.dot_general(
            att_l[1:2, :], hw,
            dimension_numbers=(((1,), (1,)), ((), ())),
            preferred_element_type=jnp.float32)                   # (1, N)

        c = fold_cols[l]
        if c >= 0:
            # att_dst was folded into padded column c of W: free lane slice.
            a_dst = hw[:, c:c + 1]                                # (N, 1)
        else:
            a_dst = lax.dot_general(
                hw, att_l[0:1, :],
                dimension_numbers=(((1,), (1,)), ((), ())),
                preferred_element_type=jnp.float32)               # (N, 1)

        # e[i, j] = leaky_relu(a_dst[i] + a_src[j], 0.2) + additive mask
        e = a_dst + a_src                                         # (N, N)
        e = jnp.where(e > 0, e, 0.2 * e)
        e = e + mask

        # masked row softmax over incoming neighbours j.  Self-loops give a
        # finite row max, so masked entries underflow to exactly 0 after exp.
        e_max = jnp.max(e, axis=-1, keepdims=True)
        p = jnp.exp(e - e_max)
        denom = jnp.sum(p, axis=-1, keepdims=True)
        alpha = p * pl.reciprocal(denom, approx=True)             # (N, N)

        # aggregate neighbours, add bias, ReLU (real padded lanes stay 0;
        # the folded-logit lane is killed by the next layer's zero W rows)
        agg = jnp.dot(alpha.astype(jnp.bfloat16), hw.astype(jnp.bfloat16),
                      preferred_element_type=jnp.float32)         # (N, P)
        h = jnp.maximum(agg + b_ref[l], 0.0)

    # final fully-connected layer (stored as layer num_gat)
    out_ref[...] = (jnp.dot(h.astype(jnp.bfloat16), w_ref[num_gat],
                            preferred_element_type=jnp.float32)
                    + b_ref[num_gat])


# ---------------------------------------------------------------------------
# Host-side helpers
# ---------------------------------------------------------------------------
def additive_adjacency_mask(edge_index, num_nodes):
    """mask[i, j] = 0.0 iff edge j -> i exists (self-loops added), else -1e30."""
    src, dst = edge_index[0], edge_index[1]
    adj = jnp.zeros((num_nodes, num_nodes), jnp.bool_)
    adj = adj.at[dst, src].set(True)
    adj = adj | jnp.eye(num_nodes, dtype=jnp.bool_)        # self-loops
    return jnp.where(adj, 0.0, -1e30).astype(jnp.float32)


def init_gcnnet_params(key, inp_dim, out_dim, hidden_topology):
    """Deterministic synthetic parameters matching GCNNet layer shapes."""
    dims = [inp_dim] + list(hidden_topology)
    gat = []
    for i in range(len(dims) - 1):
        din, dout = dims[i], dims[i + 1]
        key, k1, k2, k3 = jax.random.split(key, 4)
        scale = 1.0 / jnp.sqrt(jnp.float32(din))
        gat.append(dict(
            w=jax.random.normal(k1, (din, dout), jnp.float32) * scale,
            att_src=jax.random.normal(k2, (1, dout), jnp.float32) * 0.1,
            att_dst=jax.random.normal(k3, (1, dout), jnp.float32) * 0.1,
            bias=jnp.zeros((1, dout), jnp.float32),
        ))
    key, k1 = jax.random.split(key)
    dlast = hidden_topology[-1]
    fc = dict(
        w=jax.random.normal(k1, (dlast, out_dim), jnp.float32)
        / jnp.sqrt(jnp.float32(dlast)),
        b=jnp.zeros((1, out_dim), jnp.float32),
    )
    return {"gat": gat, "fc": fc}


def pack_params(params, pad=LANE_PAD):
    """Zero-pad / fold / stack parameters into the consolidated kernel layout.

    Per GAT layer l with W (din, dout):
      * W is zero-padded to (pad, pad).
      * If dout < pad, W @ att_dst is folded into padded column `dout`
        (fold_cols[l] = dout); otherwise fold_cols[l] = -1 and att_dst stays
        in att_all[l, 0].  att_src always lives in att_all[l, 1].
    The final fc weight/bias are stacked as layer L of w_all / b_all.
    Zero padding is exact: padded h columns either stay 0 or (the folded-logit
    column) hit zero rows of the next layer's W, so the sliced output matches
    the unpadded computation up to bf16 rounding.
    """
    w_list, att_list, b_list, fold_cols = [], [], [], []
    for layer in params["gat"]:
        w = layer["w"]
        din, dout = w.shape
        assert din <= pad and dout <= pad
        w_pad = jnp.zeros((pad, pad), jnp.float32).at[:din, :dout].set(w)
        att_dst = layer["att_dst"][0]                    # (dout,)
        att_src = layer["att_src"][0]                    # (dout,)
        if dout + 1 <= pad:
            w_pad = w_pad.at[:din, dout].set(w @ att_dst)
            fold_cols.append(dout)
        else:
            fold_cols.append(-1)
        att = jnp.zeros((2, pad), jnp.float32)
        att = att.at[0, :dout].set(att_dst)
        att = att.at[1, :dout].set(att_src)
        b = jnp.zeros((1, pad), jnp.float32).at[:, :dout].set(layer["bias"])
        w_list.append(w_pad)
        att_list.append(att)
        b_list.append(b)

    fc_w = params["fc"]["w"]
    dlast, odim = fc_w.shape
    w_list.append(jnp.zeros((pad, pad), jnp.float32)
                  .at[:dlast, :odim].set(fc_w))
    b_list.append(jnp.zeros((1, pad), jnp.float32)
                  .at[:, :odim].set(params["fc"]["b"]))

    w_all = jnp.stack(w_list).astype(jnp.bfloat16)       # (L+1, pad, pad)
    att_all = jnp.stack(att_list)                        # (L, 2, pad)  f32
    b_all = jnp.stack(b_list)                            # (L+1, 1, pad) f32
    return w_all, att_all, b_all, tuple(fold_cols)


@functools.partial(jax.jit, static_argnames=("out_dim", "fold_cols"))
def gcnnet_forward(x, mask, w_all, att_all, b_all, *, out_dim, fold_cols):
    """Eval-mode GCNNet forward for a batch of graphs, one fused Pallas call."""
    # TODO(synk): training-mode Dropout / dropout_adj not implemented
    # (identity in eval mode).
    batch, n, inp_dim = x.shape
    p = LANE_PAD
    num_gat = att_all.shape[0]
    x_pad = jnp.zeros((batch, n, p), jnp.float32).at[:, :, :inp_dim].set(x)

    kernel = functools.partial(_gcnnet_kernel, fold_cols=fold_cols)

    out_pad = pl.pallas_call(
        kernel,
        grid=(batch,),
        out_shape=jax.ShapeDtypeStruct((batch, n, p), jnp.float32),
        in_specs=[
            # per-graph blocks, indexed by the batch grid axis
            pl.BlockSpec((None, n, p), lambda b: (b, 0, 0)),          # x
            pl.BlockSpec((None, n, n), lambda b: (b, 0, 0)),          # mask
            # weights: constant index_map -> stay resident in VMEM
            pl.BlockSpec((num_gat + 1, p, p), lambda b: (0, 0, 0)),   # W (+fc)
            pl.BlockSpec((num_gat, 2, p), lambda b: (0, 0, 0)),       # att
            pl.BlockSpec((num_gat + 1, 1, p), lambda b: (0, 0, 0)),   # biases
        ],
        out_specs=pl.BlockSpec((None, n, p), lambda b: (b, 0, 0)),
        compiler_params=pltpu.CompilerParams(
            dimension_semantics=("parallel",)),
    )(x_pad, mask, w_all, att_all, b_all)

    return out_pad[:, :, :out_dim]


def gcnnet_reference(x, mask, w_all, att_all, b_all, fold_cols, out_dim):
    """Pure-JAX mirror of the kernel math (exact softmax division). Sanity only."""
    batch, n, inp_dim = x.shape
    p = w_all.shape[-1]
    num_gat = att_all.shape[0]
    x_pad = jnp.zeros((batch, n, p), jnp.float32).at[:, :, :inp_dim].set(x)

    def one(xg, mg):
        h = xg
        for l in range(num_gat):
            hw = jnp.dot(h.astype(jnp.bfloat16), w_all[l],
                         preferred_element_type=jnp.float32)
            a_src = jnp.dot(hw, att_all[l, 1, :])[None, :]        # (1, N)
            c = fold_cols[l]
            if c >= 0:
                a_dst = hw[:, c:c + 1]
            else:
                a_dst = jnp.dot(hw, att_all[l, 0, :])[:, None]    # (N, 1)
            e = a_dst + a_src
            e = jnp.where(e > 0, e, 0.2 * e) + mg
            e = e - jnp.max(e, axis=-1, keepdims=True)
            pexp = jnp.exp(e)
            alpha = pexp / jnp.sum(pexp, axis=-1, keepdims=True)
            agg = jnp.dot(alpha.astype(jnp.bfloat16), hw.astype(jnp.bfloat16),
                          preferred_element_type=jnp.float32)
            h = jnp.maximum(agg + b_all[l], 0.0)
        return (jnp.dot(h.astype(jnp.bfloat16), w_all[num_gat],
                        preferred_element_type=jnp.float32) + b_all[num_gat])

    out = jax.vmap(one)(x_pad, mask)
    return out[:, :, :out_dim]


# ---------------------------------------------------------------------------
# Main
# ---------------------------------------------------------------------------
if __name__ == "__main__":
    key = jax.random.PRNGKey(0)

    B = 4             # graphs per batch (amortizes launch / DMA cost)
    N = 16            # nodes per graph
    INP_DIM = 4       # input node-feature dim
    OUT_DIM = 8       # output dim
    HIDDEN = [32, 64, 128, 128]

    key, kx, kp = jax.random.split(key, 3)

    # node features for B graphs
    x = jax.random.normal(kx, (B, N, INP_DIM), jnp.float32)

    # deterministic edge lists per graph: ring + a few random chords
    masks = []
    for _ in range(B):
        key, ke = jax.random.split(key)
        ring_src = jnp.arange(N, dtype=jnp.int32)
        ring_dst = (ring_src + 1) % N
        rnd_src = jax.random.randint(ke, (8,), 0, N, dtype=jnp.int32)
        rnd_dst = (rnd_src + 3) % N
        edge_index = jnp.stack([jnp.concatenate([ring_src, rnd_src]),
                                jnp.concatenate([ring_dst, rnd_dst])], axis=0)
        masks.append(additive_adjacency_mask(edge_index, N))
    mask = jnp.stack(masks)                              # (B, N, N) f32

    params = init_gcnnet_params(kp, INP_DIM, OUT_DIM, HIDDEN)
    w_all, att_all, b_all, fold_cols = pack_params(params)

    out = gcnnet_forward(x, mask, w_all, att_all, b_all,
                         out_dim=OUT_DIM, fold_cols=fold_cols)
    out = jax.block_until_ready(out)

    assert out.shape == (B, N, OUT_DIM), out.shape
    assert bool(jnp.all(jnp.isfinite(out)))

    # loose check vs a pure-JAX mirror (differences: EUP approx reciprocal,
    # matmul accumulation order)
    ref = gcnnet_reference(x, mask, w_all, att_all, b_all, fold_cols, OUT_DIM)
    err = float(jnp.max(jnp.abs(out - ref)))
    assert err < 0.1, f"max |kernel - reference| = {err}"

    print("KERNEL_OK")
</pallas_src>

<mosaic_0001>
module attributes {stable_mosaic.version = 11 : i64} {
  func.func @_gcnnet_kernel(%arg0: i32, %arg1: memref<1x16x128xf32, #tpu.memory_space<vmem>>, %arg2: memref<1x16x16xf32, #tpu.memory_space<vmem>>, %arg3: memref<5x128x128xbf16, #tpu.memory_space<vmem>>, %arg4: memref<4x2x128xf32, #tpu.memory_space<vmem>>, %arg5: memref<5x1x128xf32, #tpu.memory_space<vmem>>, %arg6: memref<1x16x128xf32, #tpu.memory_space<vmem>>) attributes {dimension_semantics = [#tpu.dimension_semantics<parallel>], iteration_bounds = array<i64: 4>, scalar_prefetch = 0 : i64, scratch_operands = 0 : i64, tpu.core_type = #tpu.core_type<tc>, window_params = [{transform_indices = @transform_0, window_bounds = array<i64: 1, 16, 128>}, {transform_indices = @transform_1, window_bounds = array<i64: 1, 16, 16>}, {pipeline_mode = #tpu.pipeline_mode<synchronous>, transform_indices = @transform_2, window_bounds = array<i64: 5, 128, 128>}, {pipeline_mode = #tpu.pipeline_mode<synchronous>, transform_indices = @transform_3, window_bounds = array<i64: 4, 2, 128>}, {pipeline_mode = #tpu.pipeline_mode<synchronous>, transform_indices = @transform_4, window_bounds = array<i64: 5, 1, 128>}, {transform_indices = @transform_5, window_bounds = array<i64: 1, 16, 128>}]} {
    %c0 = arith.constant 0 : index
    %c0_0 = arith.constant 0 : index
    %c0_1 = arith.constant 0 : index
    %0 = vector.load %arg2[%c0, %c0_0, %c0_1] : memref<1x16x16xf32, #tpu.memory_space<vmem>>, vector<1x16x16xf32>
    %1 = vector.shape_cast %0 : vector<1x16x16xf32> to vector<16x16xf32>
    %c0_2 = arith.constant 0 : index
    %c0_3 = arith.constant 0 : index
    %c0_4 = arith.constant 0 : index
    %2 = vector.load %arg1[%c0_2, %c0_3, %c0_4] : memref<1x16x128xf32, #tpu.memory_space<vmem>>, vector<1x16x128xf32>
    %3 = vector.shape_cast %2 : vector<1x16x128xf32> to vector<16x128xf32>
    %c0_5 = arith.constant 0 : index
    %c0_6 = arith.constant 0 : index
    %c0_7 = arith.constant 0 : index
    %4 = vector.load %arg3[%c0_5, %c0_6, %c0_7] : memref<5x128x128xbf16, #tpu.memory_space<vmem>>, vector<1x128x128xbf16>
    %5 = vector.shape_cast %4 : vector<1x128x128xbf16> to vector<128x128xbf16>
    %6 = arith.truncf %3 : vector<16x128xf32> to vector<16x128xbf16>
    %cst = arith.constant dense<0.000000e+00> : vector<16x128xf32>
    %7 = tpu.matmul %6, %5, %cst {dimension_numbers = #tpu.dot_dimension_numbers<[1], [0], [0], [1], [0, 0, 1, 1], [], []>} : vector<16x128xbf16>, vector<128x128xbf16>, vector<16x128xf32> -> vector<16x128xf32>
    %c0_8 = arith.constant 0 : index
    %c0_9 = arith.constant 0 : index
    %c0_10 = arith.constant 0 : index
    %8 = vector.load %arg4[%c0_8, %c0_9, %c0_10] : memref<4x2x128xf32, #tpu.memory_space<vmem>>, vector<1x2x128xf32>
    %9 = vector.shape_cast %8 : vector<1x2x128xf32> to vector<2x128xf32>
    %10 = vector.extract_strided_slice %9 {offsets = [1, 0], sizes = [1, 128], strides = [1, 1]} : vector<2x128xf32> to vector<1x128xf32>
    %cst_11 = arith.constant dense<0.000000e+00> : vector<1x16xf32>
    %11 = tpu.matmul %10, %7, %cst_11 {dimension_numbers = #tpu.dot_dimension_numbers<[1], [1], [0], [0], [0, 0, 1, 0], [], []>} : vector<1x128xf32>, vector<16x128xf32>, vector<1x16xf32> -> vector<1x16xf32>
    %12 = vector.extract_strided_slice %7 {offsets = [0, 32], sizes = [16, 1], strides = [1, 1]} : vector<16x128xf32> to vector<16x1xf32>
    %13 = vector.broadcast %12 : vector<16x1xf32> to vector<16x16xf32>
    %14 = vector.broadcast %11 : vector<1x16xf32> to vector<16x16xf32>
    %15 = arith.addf %13, %14 : vector<16x16xf32>
    %cst_12 = arith.constant 0.000000e+00 : f32
    %16 = vector.broadcast %cst_12 : f32 to vector<16x16xf32>
    %17 = arith.cmpf ogt, %15, %16 : vector<16x16xf32>
    %cst_13 = arith.constant 2.000000e-01 : f32
    %18 = vector.broadcast %cst_13 : f32 to vector<16x16xf32>
    %19 = arith.mulf %18, %15 : vector<16x16xf32>
    %20 = arith.select %17, %15, %19 : vector<16x16xi1>, vector<16x16xf32>
    %21 = arith.addf %20, %1 : vector<16x16xf32>
    %cst_14 = arith.constant dense<0xFF800000> : vector<16xf32>
    %22 = vector.multi_reduction <maximumf>, %21, %cst_14 [1] : vector<16x16xf32> to vector<16xf32>
    %23 = vector.shape_cast %22 : vector<16xf32> to vector<16x1xf32>
    %24 = vector.broadcast %23 : vector<16x1xf32> to vector<16x16xf32>
    %25 = arith.subf %21, %24 : vector<16x16xf32>
    %26 = math.exp %25 : vector<16x16xf32>
    %cst_15 = arith.constant dense<0.000000e+00> : vector<16xf32>
    %27 = vector.multi_reduction <add>, %26, %cst_15 [1] : vector<16x16xf32> to vector<16xf32>
    %28 = vector.shape_cast %27 : vector<16xf32> to vector<16x1xf32>
    %29 = tpu.reciprocal %28 {approx = true} : vector<16x1xf32> -> vector<16x1xf32>
    %30 = vector.broadcast %29 : vector<16x1xf32> to vector<16x16xf32>
    %31 = arith.mulf %26, %30 : vector<16x16xf32>
    %32 = arith.truncf %31 : vector<16x16xf32> to vector<16x16xbf16>
    %33 = arith.truncf %7 : vector<16x128xf32> to vector<16x128xbf16>
    %cst_16 = arith.constant dense<0.000000e+00> : vector<16x128xf32>
    %34 = tpu.matmul %32, %33, %cst_16 {dimension_numbers = #tpu.dot_dimension_numbers<[1], [0], [0], [1], [0, 0, 1, 1], [], []>} : vector<16x16xbf16>, vector<16x128xbf16>, vector<16x128xf32> -> vector<16x128xf32>
    %c0_17 = arith.constant 0 : index
    %c0_18 = arith.constant 0 : index
    %c0_19 = arith.constant 0 : index
    %35 = vector.load %arg5[%c0_17, %c0_18, %c0_19] : memref<5x1x128xf32, #tpu.memory_space<vmem>>, vector<1x1x128xf32>
    %36 = vector.shape_cast %35 : vector<1x1x128xf32> to vector<1x128xf32>
    %37 = vector.broadcast %36 : vector<1x128xf32> to vector<16x128xf32>
    %38 = arith.addf %34, %37 : vector<16x128xf32>
    %cst_20 = arith.constant 0.000000e+00 : f32
    %39 = vector.broadcast %cst_20 : f32 to vector<16x128xf32>
    %40 = arith.maximumf %38, %39 : vector<16x128xf32>
    %c1 = arith.constant 1 : index
    %c0_21 = arith.constant 0 : index
    %c0_22 = arith.constant 0 : index
    %41 = vector.load %arg3[%c1, %c0_21, %c0_22] : memref<5x128x128xbf16, #tpu.memory_space<vmem>>, vector<1x128x128xbf16>
    %42 = vector.shape_cast %41 : vector<1x128x128xbf16> to vector<128x128xbf16>
    %43 = arith.truncf %40 : vector<16x128xf32> to vector<16x128xbf16>
    %cst_23 = arith.constant dense<0.000000e+00> : vector<16x128xf32>
    %44 = tpu.matmul %43, %42, %cst_23 {dimension_numbers = #tpu.dot_dimension_numbers<[1], [0], [0], [1], [0, 0, 1, 1], [], []>} : vector<16x128xbf16>, vector<128x128xbf16>, vector<16x128xf32> -> vector<16x128xf32>
    %c1_24 = arith.constant 1 : index
    %c0_25 = arith.constant 0 : index
    %c0_26 = arith.constant 0 : index
    %45 = vector.load %arg4[%c1_24, %c0_25, %c0_26] : memref<4x2x128xf32, #tpu.memory_space<vmem>>, vector<1x2x128xf32>
    %46 = vector.shape_cast %45 : vector<1x2x128xf32> to vector<2x128xf32>
    %47 = vector.extract_strided_slice %46 {offsets = [1, 0], sizes = [1, 128], strides = [1, 1]} : vector<2x128xf32> to vector<1x128xf32>
    %cst_27 = arith.constant dense<0.000000e+00> : vector<1x16xf32>
    %48 = tpu.matmul %47, %44, %cst_27 {dimension_numbers = #tpu.dot_dimension_numbers<[1], [1], [0], [0], [0, 0, 1, 0], [], []>} : vector<1x128xf32>, vector<16x128xf32>, vector<1x16xf32> -> vector<1x16xf32>
    %49 = vector.extract_strided_slice %44 {offsets = [0, 64], sizes = [16, 1], strides = [1, 1]} : vector<16x128xf32> to vector<16x1xf32>
    %50 = vector.broadcast %49 : vector<16x1xf32> to vector<16x16xf32>
    %51 = vector.broadcast %48 : vector<1x16xf32> to vector<16x16xf32>
    %52 = arith.addf %50, %51 : vector<16x16xf32>
    %cst_28 = arith.constant 0.000000e+00 : f32
    %53 = vector.broadcast %cst_28 : f32 to vector<16x16xf32>
    %54 = arith.cmpf ogt, %52, %53 : vector<16x16xf32>
    %cst_29 = arith.constant 2.000000e-01 : f32
    %55 = vector.broadcast %cst_29 : f32 to vector<16x16xf32>
    %56 = arith.mulf %55, %52 : vector<16x16xf32>
    %57 = arith.select %54, %52, %56 : vector<16x16xi1>, vector<16x16xf32>
    %58 = arith.addf %57, %1 : vector<16x16xf32>
    %cst_30 = arith.constant dense<0xFF800000> : vector<16xf32>
    %59 = vector.multi_reduction <maximumf>, %58, %cst_30 [1] : vector<16x16xf32> to vector<16xf32>
    %60 = vector.shape_cast %59 : vector<16xf32> to vector<16x1xf32>
    %61 = vector.broadcast %60 : vector<16x1xf32> to vector<16x16xf32>
    %62 = arith.subf %58, %61 : vector<16x16xf32>
    %63 = math.exp %62 : vector<16x16xf32>
    %cst_31 = arith.constant dense<0.000000e+00> : vector<16xf32>
    %64 = vector.multi_reduction <add>, %63, %cst_31 [1] : vector<16x16xf32> to vector<16xf32>
    %65 = vector.shape_cast %64 : vector<16xf32> to vector<16x1xf32>
    %66 = tpu.reciprocal %65 {approx = true} : vector<16x1xf32> -> vector<16x1xf32>
    %67 = vector.broadcast %66 : vector<16x1xf32> to vector<16x16xf32>
    %68 = arith.mulf %63, %67 : vector<16x16xf32>
    %69 = arith.truncf %68 : vector<16x16xf32> to vector<16x16xbf16>
    %70 = arith.truncf %44 : vector<16x128xf32> to vector<16x128xbf16>
    %cst_32 = arith.constant dense<0.000000e+00> : vector<16x128xf32>
    %71 = tpu.matmul %69, %70, %cst_32 {dimension_numbers = #tpu.dot_dimension_numbers<[1], [0], [0], [1], [0, 0, 1, 1], [], []>} : vector<16x16xbf16>, vector<16x128xbf16>, vector<16x128xf32> -> vector<16x128xf32>
    %c1_33 = arith.constant 1 : index
    %c0_34 = arith.constant 0 : index
    %c0_35 = arith.constant 0 : index
    %72 = vector.load %arg5[%c1_33, %c0_34, %c0_35] : memref<5x1x128xf32, #tpu.memory_space<vmem>>, vector<1x1x128xf32>
    %73 = vector.shape_cast %72 : vector<1x1x128xf32> to vector<1x128xf32>
    %74 = vector.broadcast %73 : vector<1x128xf32> to vector<16x128xf32>
    %75 = arith.addf %71, %74 : vector<16x128xf32>
    %cst_36 = arith.constant 0.000000e+00 : f32
    %76 = vector.broadcast %cst_36 : f32 to vector<16x128xf32>
    %77 = arith.maximumf %75, %76 : vector<16x128xf32>
    %c2 = arith.constant 2 : index
    %c0_37 = arith.constant 0 : index
    %c0_38 = arith.constant 0 : index
    %78 = vector.load %arg3[%c2, %c0_37, %c0_38] : memref<5x128x128xbf16, #tpu.memory_space<vmem>>, vector<1x128x128xbf16>
    %79 = vector.shape_cast %78 : vector<1x128x128xbf16> to vector<128x128xbf16>
    %80 = arith.truncf %77 : vector<16x128xf32> to vector<16x128xbf16>
    %cst_39 = arith.constant dense<0.000000e+00> : vector<16x128xf32>
    %81 = tpu.matmul %80, %79, %cst_39 {dimension_numbers = #tpu.dot_dimension_numbers<[1], [0], [0], [1], [0, 0, 1, 1], [], []>} : vector<16x128xbf16>, vector<128x128xbf16>, vector<16x128xf32> -> vector<16x128xf32>
    %c2_40 = arith.constant 2 : index
    %c0_41 = arith.constant 0 : index
    %c0_42 = arith.constant 0 : index
    %82 = vector.load %arg4[%c2_40, %c0_41, %c0_42] : memref<4x2x128xf32, #tpu.memory_space<vmem>>, vector<1x2x128xf32>
    %83 = vector.shape_cast %82 : vector<1x2x128xf32> to vector<2x128xf32>
    %84 = vector.extract_strided_slice %83 {offsets = [1, 0], sizes = [1, 128], strides = [1, 1]} : vector<2x128xf32> to vector<1x128xf32>
    %cst_43 = arith.constant dense<0.000000e+00> : vector<1x16xf32>
    %85 = tpu.matmul %84, %81, %cst_43 {dimension_numbers = #tpu.dot_dimension_numbers<[1], [1], [0], [0], [0, 0, 1, 0], [], []>} : vector<1x128xf32>, vector<16x128xf32>, vector<1x16xf32> -> vector<1x16xf32>
    %86 = vector.extract_strided_slice %83 {offsets = [0, 0], sizes = [1, 128], strides = [1, 1]} : vector<2x128xf32> to vector<1x128xf32>
    %cst_44 = arith.constant dense<0.000000e+00> : vector<16x1xf32>
    %87 = tpu.matmul %81, %86, %cst_44 {dimension_numbers = #tpu.dot_dimension_numbers<[1], [1], [0], [0], [0, 0, 1, 0], [], []>} : vector<16x128xf32>, vector<1x128xf32>, vector<16x1xf32> -> vector<16x1xf32>
    %88 = vector.broadcast %87 : vector<16x1xf32> to vector<16x16xf32>
    %89 = vector.broadcast %85 : vector<1x16xf32> to vector<16x16xf32>
    %90 = arith.addf %88, %89 : vector<16x16xf32>
    %cst_45 = arith.constant 0.000000e+00 : f32
    %91 = vector.broadcast %cst_45 : f32 to vector<16x16xf32>
    %92 = arith.cmpf ogt, %90, %91 : vector<16x16xf32>
    %cst_46 = arith.constant 2.000000e-01 : f32
    %93 = vector.broadcast %cst_46 : f32 to vector<16x16xf32>
    %94 = arith.mulf %93, %90 : vector<16x16xf32>
    %95 = arith.select %92, %90, %94 : vector<16x16xi1>, vector<16x16xf32>
    %96 = arith.addf %95, %1 : vector<16x16xf32>
    %cst_47 = arith.constant dense<0xFF800000> : vector<16xf32>
    %97 = vector.multi_reduction <maximumf>, %96, %cst_47 [1] : vector<16x16xf32> to vector<16xf32>
    %98 = vector.shape_cast %97 : vector<16xf32> to vector<16x1xf32>
    %99 = vector.broadcast %98 : vector<16x1xf32> to vector<16x16xf32>
    %100 = arith.subf %96, %99 : vector<16x16xf32>
    %101 = math.exp %100 : vector<16x16xf32>
    %cst_48 = arith.constant dense<0.000000e+00> : vector<16xf32>
    %102 = vector.multi_reduction <add>, %101, %cst_48 [1] : vector<16x16xf32> to vector<16xf32>
    %103 = vector.shape_cast %102 : vector<16xf32> to vector<16x1xf32>
    %104 = tpu.reciprocal %103 {approx = true} : vector<16x1xf32> -> vector<16x1xf32>
    %105 = vector.broadcast %104 : vector<16x1xf32> to vector<16x16xf32>
    %106 = arith.mulf %101, %105 : vector<16x16xf32>
    %107 = arith.truncf %106 : vector<16x16xf32> to vector<16x16xbf16>
    %108 = arith.truncf %81 : vector<16x128xf32> to vector<16x128xbf16>
    %cst_49 = arith.constant dense<0.000000e+00> : vector<16x128xf32>
    %109 = tpu.matmul %107, %108, %cst_49 {dimension_numbers = #tpu.dot_dimension_numbers<[1], [0], [0], [1], [0, 0, 1, 1], [], []>} : vector<16x16xbf16>, vector<16x128xbf16>, vector<16x128xf32> -> vector<16x128xf32>
    %c2_50 = arith.constant 2 : index
    %c0_51 = arith.constant 0 : index
    %c0_52 = arith.constant 0 : index
    %110 = vector.load %arg5[%c2_50, %c0_51, %c0_52] : memref<5x1x128xf32, #tpu.memory_space<vmem>>, vector<1x1x128xf32>
    %111 = vector.shape_cast %110 : vector<1x1x128xf32> to vector<1x128xf32>
    %112 = vector.broadcast %111 : vector<1x128xf32> to vector<16x128xf32>
    %113 = arith.addf %109, %112 : vector<16x128xf32>
    %cst_53 = arith.constant 0.000000e+00 : f32
    %114 = vector.broadcast %cst_53 : f32 to vector<16x128xf32>
    %115 = arith.maximumf %113, %114 : vector<16x128xf32>
    %c3 = arith.constant 3 : index
    %c0_54 = arith.constant 0 : index
    %c0_55 = arith.constant 0 : index
    %116 = vector.load %arg3[%c3, %c0_54, %c0_55] : memref<5x128x128xbf16, #tpu.memory_space<vmem>>, vector<1x128x128xbf16>
    %117 = vector.shape_cast %116 : vector<1x128x128xbf16> to vector<128x128xbf16>
    %118 = arith.truncf %115 : vector<16x128xf32> to vector<16x128xbf16>
    %cst_56 = arith.constant dense<0.000000e+00> : vector<16x128xf32>
    %119 = tpu.matmul %118, %117, %cst_56 {dimension_numbers = #tpu.dot_dimension_numbers<[1], [0], [0], [1], [0, 0, 1, 1], [], []>} : vector<16x128xbf16>, vector<128x128xbf16>, vector<16x128xf32> -> vector<16x128xf32>
    %c3_57 = arith.constant 3 : index
    %c0_58 = arith.constant 0 : index
    %c0_59 = arith.constant 0 : index
    %120 = vector.load %arg4[%c3_57, %c0_58, %c0_59] : memref<4x2x128xf32, #tpu.memory_space<vmem>>, vector<1x2x128xf32>
    %121 = vector.shape_cast %120 : vector<1x2x128xf32> to vector<2x128xf32>
    %122 = vector.extract_strided_slice %121 {offsets = [1, 0], sizes = [1, 128], strides = [1, 1]} : vector<2x128xf32> to vector<1x128xf32>
    %cst_60 = arith.constant dense<0.000000e+00> : vector<1x16xf32>
    %123 = tpu.matmul %122, %119, %cst_60 {dimension_numbers = #tpu.dot_dimension_numbers<[1], [1], [0], [0], [0, 0, 1, 0], [], []>} : vector<1x128xf32>, vector<16x128xf32>, vector<1x16xf32> -> vector<1x16xf32>
    %124 = vector.extract_strided_slice %121 {offsets = [0, 0], sizes = [1, 128], strides = [1, 1]} : vector<2x128xf32> to vector<1x128xf32>
    %cst_61 = arith.constant dense<0.000000e+00> : vector<16x1xf32>
    %125 = tpu.matmul %119, %124, %cst_61 {dimension_numbers = #tpu.dot_dimension_numbers<[1], [1], [0], [0], [0, 0, 1, 0], [], []>} : vector<16x128xf32>, vector<1x128xf32>, vector<16x1xf32> -> vector<16x1xf32>
    %126 = vector.broadcast %125 : vector<16x1xf32> to vector<16x16xf32>
    %127 = vector.broadcast %123 : vector<1x16xf32> to vector<16x16xf32>
    %128 = arith.addf %126, %127 : vector<16x16xf32>
    %cst_62 = arith.constant 0.000000e+00 : f32
    %129 = vector.broadcast %cst_62 : f32 to vector<16x16xf32>
    %130 = arith.cmpf ogt, %128, %129 : vector<16x16xf32>
    %cst_63 = arith.constant 2.000000e-01 : f32
    %131 = vector.broadcast %cst_63 : f32 to vector<16x16xf32>
    %132 = arith.mulf %131, %128 : vector<16x16xf32>
    %133 = arith.select %130, %128, %132 : vector<16x16xi1>, vector<16x16xf32>
    %134 = arith.addf %133, %1 : vector<16x16xf32>
    %cst_64 = arith.constant dense<0xFF800000> : vector<16xf32>
    %135 = vector.multi_reduction <maximumf>, %134, %cst_64 [1] : vector<16x16xf32> to vector<16xf32>
    %136 = vector.shape_cast %135 : vector<16xf32> to vector<16x1xf32>
    %137 = vector.broadcast %136 : vector<16x1xf32> to vector<16x16xf32>
    %138 = arith.subf %134, %137 : vector<16x16xf32>
    %139 = math.exp %138 : vector<16x16xf32>
    %cst_65 = arith.constant dense<0.000000e+00> : vector<16xf32>
    %140 = vector.multi_reduction <add>, %139, %cst_65 [1] : vector<16x16xf32> to vector<16xf32>
    %141 = vector.shape_cast %140 : vector<16xf32> to vector<16x1xf32>
    %142 = tpu.reciprocal %141 {approx = true} : vector<16x1xf32> -> vector<16x1xf32>
    %143 = vector.broadcast %142 : vector<16x1xf32> to vector<16x16xf32>
    %144 = arith.mulf %139, %143 : vector<16x16xf32>
    %145 = arith.truncf %144 : vector<16x16xf32> to vector<16x16xbf16>
    %146 = arith.truncf %119 : vector<16x128xf32> to vector<16x128xbf16>
    %cst_66 = arith.constant dense<0.000000e+00> : vector<16x128xf32>
    %147 = tpu.matmul %145, %146, %cst_66 {dimension_numbers = #tpu.dot_dimension_numbers<[1], [0], [0], [1], [0, 0, 1, 1], [], []>} : vector<16x16xbf16>, vector<16x128xbf16>, vector<16x128xf32> -> vector<16x128xf32>
    %c3_67 = arith.constant 3 : index
    %c0_68 = arith.constant 0 : index
    %c0_69 = arith.constant 0 : index
    %148 = vector.load %arg5[%c3_67, %c0_68, %c0_69] : memref<5x1x128xf32, #tpu.memory_space<vmem>>, vector<1x1x128xf32>
    %149 = vector.shape_cast %148 : vector<1x1x128xf32> to vector<1x128xf32>
    %150 = vector.broadcast %149 : vector<1x128xf32> to vector<16x128xf32>
    %151 = arith.addf %147, %150 : vector<16x128xf32>
    %cst_70 = arith.constant 0.000000e+00 : f32
    %152 = vector.broadcast %cst_70 : f32 to vector<16x128xf32>
    %153 = arith.maximumf %151, %152 : vector<16x128xf32>
    %154 = arith.truncf %153 : vector<16x128xf32> to vector<16x128xbf16>
    %c4 = arith.constant 4 : index
    %c0_71 = arith.constant 0 : index
    %c0_72 = arith.constant 0 : index
    %155 = vector.load %arg3[%c4, %c0_71, %c0_72] : memref<5x128x128xbf16, #tpu.memory_space<vmem>>, vector<1x128x128xbf16>
    %156 = vector.shape_cast %155 : vector<1x128x128xbf16> to vector<128x128xbf16>
    %cst_73 = arith.constant dense<0.000000e+00> : vector<16x128xf32>
    %157 = tpu.matmul %154, %156, %cst_73 {dimension_numbers = #tpu.dot_dimension_numbers<[1], [0], [0], [1], [0, 0, 1, 1], [], []>} : vector<16x128xbf16>, vector<128x128xbf16>, vector<16x128xf32> -> vector<16x128xf32>
    %c4_74 = arith.constant 4 : index
    %c0_75 = arith.constant 0 : index
    %c0_76 = arith.constant 0 : index
    %158 = vector.load %arg5[%c4_74, %c0_75, %c0_76] : memref<5x1x128xf32, #tpu.memory_space<vmem>>, vector<1x1x128xf32>
    %159 = vector.shape_cast %158 : vector<1x1x128xf32> to vector<1x128xf32>
    %160 = vector.broadcast %159 : vector<1x128xf32> to vector<16x128xf32>
    %161 = arith.addf %157, %160 : vector<16x128xf32>
    %c0_77 = arith.constant 0 : index
    %c0_78 = arith.constant 0 : index
    %c0_79 = arith.constant 0 : index
    %162 = vector.load %arg6[%c0_77, %c0_78, %c0_79] : memref<1x16x128xf32, #tpu.memory_space<vmem>>, vector<1x16x128xf32>
    %163 = vector.shape_cast %162 : vector<1x16x128xf32> to vector<16x128xf32>
    %164 = vector.shape_cast %161 : vector<16x128xf32> to vector<1x16x128xf32>
    tpu.vector_store %arg6[%c0_77, %c0_78, %c0_79], %164 {strides = array<i32>} : memref<1x16x128xf32, #tpu.memory_space<vmem>>, vector<1x16x128xf32>,
    return
  }
  func.func @transform_0(%arg0: i32) -> (i32, i32, i32) {
    %c0_i32 = arith.constant 0 : i32
    %c0_i32_0 = arith.constant 0 : i32
    %c0_i32_1 = arith.constant 0 : i32
    return %arg0, %c0_i32, %c0_i32_0 : i32, i32, i32
  }
  func.func @transform_1(%arg0: i32) -> (i32, i32, i32) {
    %c0_i32 = arith.constant 0 : i32
    %c0_i32_0 = arith.constant 0 : i32
    %c0_i32_1 = arith.constant 0 : i32
    return %arg0, %c0_i32, %c0_i32_0 : i32, i32, i32
  }
  func.func @transform_2(%arg0: i32) -> (i32, i32, i32) {
    %c0_i32 = arith.constant 0 : i32
    %c0_i32_0 = arith.constant 0 : i32
    %c0_i32_1 = arith.constant 0 : i32
    %c0_i32_2 = arith.constant 0 : i32
    return %c0_i32, %c0_i32_0, %c0_i32_1 : i32, i32, i32
  }
  func.func @transform_3(%arg0: i32) -> (i32, i32, i32) {
    %c0_i32 = arith.constant 0 : i32
    %c0_i32_0 = arith.constant 0 : i32
    %c0_i32_1 = arith.constant 0 : i32
    %c0_i32_2 = arith.constant 0 : i32
    return %c0_i32, %c0_i32_0, %c0_i32_1 : i32, i32, i32
  }
  func.func @transform_4(%arg0: i32) -> (i32, i32, i32) {
    %c0_i32 = arith.constant 0 : i32
    %c0_i32_0 = arith.constant 0 : i32
    %c0_i32_1 = arith.constant 0 : i32
    %c0_i32_2 = arith.constant 0 : i32
    return %c0_i32, %c0_i32_0, %c0_i32_1 : i32, i32, i32
  }
  func.func @transform_5(%arg0: i32) -> (i32, i32, i32) {
    %c0_i32 = arith.constant 0 : i32
    %c0_i32_0 = arith.constant 0 : i32
    %c0_i32_1 = arith.constant 0 : i32
    return %arg0, %c0_i32, %c0_i32_0 : i32, i32, i32
  }
}

</mosaic_0001>

<bundles_post_ra>
// kernel: gcnnet_forward.1
= control target key start
LH: loop header
LB: loop body
LE: loop exit
PB: predicated region body
PF: predicated region fallthrough
CT: control target
= control target key end

     0   :  { %10 = vsyncpa [#allocation3], 0  ;;  %s2077_s18 = smov 0   ;;  %s2282_s0 = inlined_call_operand.vmem [shape: f32[4,16,128], index: 0, kind: input, shape index: {}]   ;;  %s2283_s1 = inlined_call_operand.vmem [shape: f32[4,16,16], index: 1, kind: input, shape index: {}]   ;;  %s2284_s2 = inlined_call_operand.hbm [shape: bf16[5,128,128], index: 2, kind: input, shape index: {}]   ;;  %s2285_s3 = inlined_call_operand.vmem [shape: f32[4,2,128], index: 3, kind: input, shape index: {}]   ;;  %s2286_s4 = inlined_call_operand.vmem [shape: f32[5,1,128], index: 4, kind: input, shape index: {}]   ;;  %s2287_s5 = inlined_call_operand.vmem [shape: f32[4,16,128], index: 5, kind: output, shape index: {}]  }
   0x1 LB: > { %s2083_s19 = sadd.s32 4294967295, %s2037_s18   ;;  %p1597_p0 = scmp.ge.s32.totalorder %s2037_s18, 1  ;;  %s2037_s18 = sphi %s2077_s18, %s16_s18  }
   0x2   : > { %p162_p1 = scmp.lt.s32.totalorder %s2037_s18, 5  ;;  %s2039_s20 = smov [#allocation2]  }
   0x3   : > { %s174_s21 = sshll.u32 %s2039_s20, 4  ;;  %p2288_p3 = scmp.eq.s32.totalorder %s2083_s19, 0  ;;  %s175_s21 = int_to_ptr.vmem [resolvable:$true] %s174_s21 }
   0x4   : > { %p2087_p2 = pnand %p1597_p0, %p162_p1  ;;  %s1999_s26 = scalar_lea.hbm %s2284_s2, 5120 }
   0x5   : > { %p2000_p6 = scmp.ne.s32.totalorder %s2284_s2, %s1999_s26  ;;  %p2006_p10 = scmp.lt.u32.totalorder %s1999_s26, %s2284_s2 }
   0x6   : > { %s2290_s22 = scalar_select %p2087_p2, 1, 0 }
   0x7   : > { %p1902_p4 = pneg %p2087_p2 }
   0x9   : > { %p2096_p5 = pnand %p2288_p3, %p1902_p4 }
   0xb   : > { %p2001_p7 = pneg %p2096_p5 }
   0xd   : > { %p2002_p8 = pnand %p2001_p7, %p2000_p6 }
   0xf   : > { %p2003_p9 = pneg %p2002_p8 }
  0x11   : > { %p2008_p11 = pnand %p2006_p10, %p2003_p9 }
  0x13   : > { %2011 = shalt.err (!%p2008_p11)
}
  0x14   : > { %s2012_s6 = scalar_lea.vmem %s175_s21, 5120  ;;  %p2020_p1 = scmp.lt.s32.totalorder %s175_s21, %s175_s21 }
  0x15   : > { %p2013_p12 = scmp.ne.s32.totalorder %s175_s21, %s2012_s6  ;;  %p2021_p4 = scmp.lt.s32.totalorder %s2012_s6, %s2012_s6 }
  0x17   : > { %p2015_p13 = pnand %p2013_p12, %p2001_p7  ;;  %p2022_p3 = por %p2021_p4, %p2020_p1 }
  0x19   : > { %p2016_p0 = pneg %p2015_p13 }
  0x1b   : > { %p2023_p2 = pnand %p2022_p3, %p2016_p0 }
  0x1d   : > { %2026 = shalt.err (!%p2023_p2)
}
  0x1e   : > { %s2040_s7 = smov 64   ;;  %s2041_s8 = smov 4  }
  0x1f   : > { %1905 = dma.hbm_to_vmem [thread:$0]  (!%p2096_p5), %s2284_s2, 5120, %s175_s21, [#allocation3], %s2040_s7, %s2040_s7, %s2041_s8  }
  0x20   : > { %p2292_p6 = scmp.ne.s32.totalorder %s2290_s22, 0 }
  0x21   : > { %p2293_p8 = scmp.eq.s32.totalorder (!%p2292_p6), %s2083_s19, 0 }
  0x22   : > { %212 = sbr.rel (%p2292_p6) target bundleno = 4226 (0x1082), region = 40 }
  0x29   : > { %2032 = dma.done.wait (%p2293_p8), [#allocation3], 5120   ;;  %p2294_p7 = pmov %p2293_p8 }
  0x2a   : > { %v2042_v0 = vmov 0.0   ;;  %vm2043_vm0 = vmmov 0   ;;  %v2044_v1 = vmov 32   ;;  %v1927_v2 = vld [vmem:[#allocation2] sm:$0xff]   ;;  %p245_p2 = scmp.lt.s32.totalorder %s2083_s19, 3  ;;  %v1928_v3 = vld [vmem:[#allocation2 + $0x8] sm:$0xff]   ;;  %v455_v21 = vlaneseq }
  0x2b   : > { %2034 = vsyncadd (%p2294_p7), [#allocation3], 4294962176  ;;  %1734 = vmatprep.subr.bf16.mxu0 %v2042_v0  ;;  %1750 = vmatprep.mubr.msk.bf16.mxu0 %vm2043_vm0, %v2042_v0  ;;  %v1929_v4 = vld [vmem:[#allocation2 + $0x10] sm:$0xff]   ;;  %v1930_v5 = vld [vmem:[#allocation2 + $0x18] sm:$0xff]   ;;  %v2045_v13 = vmov 0.0|0.0   ;;  %vm469_vm3 = vcmask 130048  }
  0x2c   : > { %1924 = vset.pattern.permute.xlu0 %v2044_v1  ;;  %1758 = vmatprep.mubr.msk.f32.mxu1 %vm2043_vm0, %v2042_v0  ;;  %s2296_s19 = smov (!%p245_p2, %s2083_s19), 3  ;;  %v1931_v6 = vld [vmem:[#allocation2 + $0x20] sm:$0xff]   ;;  %v1932_v7 = vld [vmem:[#allocation2 + $0x28] sm:$0xff]   ;;  %v1933_v8 = vld [vmem:[#allocation2 + $0x30] sm:$0xff]   ;;  %v456_v22 = vshrl.u32 %v455_v21, 7 }
  0x2d   : > { %1735 = vmatpush3.bf16.msra.mxu0 %v1927_v2  ;;  %s2131_s11 = sshll.u32 %s2296_s19, 4  ;;  %v1934_v9 = vld [vmem:[#allocation2 + $0x38] sm:$0xff]   ;;  %1886 = vmatprep.subr.bf16.mxu1 %v2045_v13  ;;  %v371_v19 = vld [vmem:[%s2285_s3] sm:$0x3]  ;;  %v1936_v59 = vld [vmem:[#allocation2 + $0x48] sm:$0xff]  }
  0x2e   : > { %1736 = vmatprep.subr.bf16.mxu0 %v2042_v0  ;;  %s249_s14 = scalar_lea.vmem %s2282_s0, %s2131_s11  ;;  %v373_v20 = vrot.slane %v371_v19, 1  ;;  %v2153_v24 = vsub.s32 0, %v456_v22  ;;  %s254_s20 = scalar_lea.vmem %s2283_s1, %s2131_s11  ;;  %v1935_v57 = vld [vmem:[#allocation2 + $0x40] sm:$0xff]   ;;  %v1937_v60 = vld [vmem:[#allocation2 + $0x50] sm:$0xff]   ;;  %v1938_v61 = vld [vmem:[#allocation2 + $0x58] sm:$0xff]  }
  0x2f   : > { %v263_v10 = vld [vmem:[%s249_s14] sm:$0xff]  ;;  %v264_v11 = vld [vmem:[%s249_s14 + $0x8] sm:$0xff]  ;;  %v1941_v1 = vld [vmem:[#allocation2 + $0x70] sm:$0xff]   ;;  %s259_s15 = scalar_lea.vmem %s2287_s5, %s2131_s11 }
  0x30   : > { %v281_v12 = vpack.c.bf16 %v264_v11, %v263_v10  ;;  %v2160_v31 = vld [vmem:[%s254_s20] sm:$0xff]  ;;  %v2162_v35 = vld [vmem:[%s254_s20 + $0x8] sm:$0xff]  ;;  %v1942_v2 = vld [vmem:[#allocation2 + $0x78] sm:$0xff]  }
  0x31   : > { %1737 = vmatpush3.bf16.msra.mxu0 %v1928_v3  ;;  %v1939_v62 = vld [vmem:[#allocation2 + $0x60] sm:$0xff]   ;;  %v1940_v63 = vld [vmem:[#allocation2 + $0x68] sm:$0xff]   ;;  %v2046_v3 = vmov 64  }
  0x32   : > { %1738 = vmatprep.subr.bf16.mxu0 %v2042_v0  ;;  %1925 = vset.pattern.permute.xlu1 %v2046_v3 }
  0x35   : > { %1739 = vmatpush3.bf16.msra.mxu0 %v1929_v4  ;;  %v1616_v4 = vld [vmem:[%s2286_s4] ss:$0 sm:$0xff] }
  0x36   : > { %1740 = vmatprep.subr.bf16.mxu0 %v2042_v0 }
  0x39   : > { %1741 = vmatpush3.bf16.msra.mxu0 %v1930_v5 }
  0x3a   : > { %1742 = vmatprep.subr.bf16.mxu0 %v2042_v0 }
  0x3d   : > { %1743 = vmatpush3.bf16.msra.mxu0 %v1931_v6 }
  0x3e   : > { %1744 = vmatprep.subr.bf16.mxu0 %v2042_v0 }
  0x41   : > { %1745 = vmatpush3.bf16.msra.mxu0 %v1932_v7 }
  0x42   : > { %1746 = vmatprep.subr.bf16.mxu0 %v2042_v0 }
  0x45   : > { %1747 = vmatpush3.bf16.msra.mxu0 %v1933_v8 }
  0x46   : > { %1748 = vmatprep.subr.bf16.mxu0 %v2042_v0 }
  0x49   : > { %1749 = vmatpush3.bf16.msra.mxu0 %v1934_v9 }
  0x4a   : > { %1800 = vmatprep.subr.bf16.mxu0 %v2042_v0 }
  0x4c   : > { %1751 = vmatmul.mubr.bf16.vlgmr.msra.gmra.mrb[0].mxu0 %v281_v12 }
  0x4d   : > { %1816 = vmatprep.mubr.msk.bf16.mxu0 %vm2043_vm0, %v2042_v0 }
 0x11f   : > { %v364_v14 = vpop.f32.mrb[0].mxu0 }
 0x120   : > { %447 = vperm.xlu0 %1924, %v364_v14   ;;  %v1752_v15 = vpop.f32.mrb[1].mxu0 }
 0x121   : > { %v367_v16 = vpop.f32.mrb[2].mxu0 }
 0x122   : > { %v1753_v17 = vpop.f32.mrb[3].mxu0  ;;  %v1887_v18 = vpack.c.bf16 %v367_v16, %v364_v14 }
 0x124   : > { %452 = vperm.xlu0 %1924, %v367_v16   ;;  %1888 = vmatpush3.bf16.xpose.msra.mxu1 %v1887_v18 }
 0x125   : > { %1761 = vmatprep.subr.bf16.mxu1 %v2042_v0 }
 0x128   : > { %1926 = vset.pattern.permute.xlu0 %v2046_v3 }
 0x12b   : > { %1759 = vmatmul.mubr.f32.vlgmr.msra.gmra.mrb[0].mxu1 %v373_v20  ;;  %v1626_v20 = vld [vmem:[%s2285_s3 + $0x2] sm:$0x3] }
 0x12c   : > { %1762 = vmatpush3.bf16.msra.mxu1 %v1887_v18  ;;  %1763 = vmatprep.mubr.msk.bf16.mxu1 %vm2043_vm0, %v2042_v0  ;;  %v657_v21 = vrot.slane %v1626_v20, 1 }
 0x12d   : > { %1767 = vmatprep.subr.bf16.mxu1 %v2042_v0 }
 0x19f   : > { %v448_v23 = vpop.permute.xlu0 %447 }
 0x1a3   : > { %v453_v28 = vpop.permute.xlu0 %452 }
 0x1fe   : > { %v441_v25 = vpop.f32.mrb[0].mxu1 }
 0x1ff   : > { %v458_v26 = vrot.slane %v441_v25, %v2153_v24  ;;  %v1760_v27 = vpop.f32.mrb[1].mxu1 }
 0x201   : > { %v459_v29 = vadd.f32 %v458_v26, %v448_v23  ;;  %v460_v30 = vadd.f32 %v458_v26, %v453_v28 }
 0x203   : > { %v463_v32 = vmul.f32 0.2, %v459_v29  ;;  %v464_v33 = vmul.f32 0.2, %v460_v30  ;;  %vm461_vm1 = vcmp.gt.f32.partialorder %v459_v29, 0.0  ;;  %vm462_vm2 = vcmp.gt.f32.partialorder %v460_v30, 0.0 }
 0x205   : > { %v465_v34 = vsel %vm461_vm1, %v459_v29, %v463_v32  ;;  %v466_v36 = vsel %vm462_vm2, %v460_v30, %v464_v33 }
 0x206   : > { %v467_v37 = vadd.f32 %v465_v34, %v2160_v31  ;;  %v468_v39 = vadd.f32 %v466_v36, %v2162_v35 }
 0x208   : > { %v470_v38 = vsel %vm469_vm3, %v467_v37, -inf  ;;  %v473_v40 = vsel %vm469_vm3, %v468_v39, -inf }
 0x209   : > { %471 = vmax.xlane.f32.xlu1 %v470_v38 }
 0x20d   : > { %474 = vmax.xlane.f32.xlu1 %v473_v40 }
 0x296   : > { %v472_v41 = vpop.xlane.xlu1 %471 }
 0x297   : > { %v476_v42 = vsub.f32 %v467_v37, %v472_v41 }
 0x299   : > { %v478_v43 = vmul.f32 1.442695, %v476_v42 }
 0x29a   : > { %v475_v44 = vpop.xlane.xlu1 %474 }
 0x29b   : > { %1967 = vpow2.f32 %v478_v43  ;;  %v477_v45 = vsub.f32 %v468_v39, %v475_v44 }
 0x29d   : > { %v480_v46 = vmul.f32 1.442695, %v477_v45 }
 0x29f   : > { %1969 = vpow2.f32 %v480_v46 }
 0x2a5   : > { %v1968_v47 = vpop.eup %1967 }
 0x2a6   : > { %v482_v48 = vsel %vm469_vm3, %v1968_v47, 0.0 }
 0x2a7   : > { %483 = vadd.xlane.f32.xlu0 %v482_v48 }
 0x2a9   : > { %v1970_v49 = vpop.eup %1969 }
 0x2aa   : > { %v485_v50 = vsel %vm469_vm3, %v1970_v49, 0.0 }
 0x2ab   : > { %486 = vadd.xlane.f32.xlu1 %v485_v50  ;;  %v1943_v50 = vld [vmem:[#allocation2 + $0x80] sm:$0xff]  }
 0x2ac   : > { %1801 = vmatpush3.bf16.msra.mxu0 %v1943_v50 }
 0x2ad   : > { %1802 = vmatprep.subr.bf16.mxu0 %v2042_v0 }
 0x334   : > { %v484_v51 = vpop.xlane.xlu0 %483 }
 0x335   : > { %1971 = vrcp.f32 %v484_v51  ;;  %v1944_v51 = vld [vmem:[#allocation2 + $0x88] sm:$0xff]  }
 0x336   : > { %1803 = vmatpush3.bf16.msra.mxu0 %v1944_v51 }
 0x337   : > { %1804 = vmatprep.subr.bf16.mxu0 %v2042_v0 }
 0x338   : > { %v487_v52 = vpop.xlane.xlu1 %486 }
 0x339   : > { %1973 = vrcp.f32 %v487_v52  ;;  %v1945_v52 = vld [vmem:[#allocation2 + $0x90] sm:$0xff]  }
 0x33a   : > { %1805 = vmatpush3.bf16.msra.mxu0 %v1945_v52 }
 0x33b   : > { %1806 = vmatprep.subr.bf16.mxu0 %v2042_v0 }
 0x33f   : > { %v1972_v53 = vpop.eup %1971 }
 0x340   : > { %v490_v55 = vmul.f32 %v1972_v53, %v1968_v47  ;;  %v1946_v53 = vld [vmem:[#allocation2 + $0x98] sm:$0xff]  }
 0x341   : > { %1807 = vmatpush3.bf16.msra.mxu0 %v1946_v53 }
 0x342   : > { %1808 = vmatprep.subr.bf16.mxu0 %v2042_v0 }
 0x343   : > { %v1974_v54 = vpop.eup %1973 }
 0x344   : > { %v491_v56 = vmul.f32 %v1974_v54, %v1970_v49  ;;  %v1947_v54 = vld [vmem:[#allocation2 + $0xa0] sm:$0xff]  }
 0x345   : > { %1809 = vmatpush3.bf16.msra.mxu0 %v1947_v54 }
 0x346   : > { %v492_v58 = vpack.c.bf16 %v491_v56, %v490_v55  ;;  %v1948_v55 = vld [vmem:[#allocation2 + $0xa8] sm:$0xff]   ;;  %1810 = vmatprep.subr.bf16.mxu0 %v2042_v0 }
 0x348   : > { %1764 = vmatmul.mubr.msk.bf16.vlgmr.msra.gmra.mrb[4].mxu1 %vm469_vm3, %v492_v58 }
 0x349   : > { %1768 = vmatpush3.bf16.msra.mxu1 %v1935_v57  ;;  %1783 = vmatprep.mubr.msk.bf16.mxu1 %vm2043_vm0, %v2042_v0 }
 0x34a   : > { %1769 = vmatprep.subr.bf16.mxu1 %v2042_v0  ;;  %1811 = vmatpush3.bf16.msra.mxu0 %v1948_v55 }
 0x34b   : > { %1812 = vmatprep.subr.bf16.mxu0 %v2042_v0 }
 0x34d   : > { %1770 = vmatpush3.bf16.msra.mxu1 %v1936_v59 }
 0x34e   : > { %1771 = vmatprep.subr.bf16.mxu1 %v2042_v0 }
 0x351   : > { %1772 = vmatpush3.bf16.msra.mxu1 %v1937_v60 }
 0x352   : > { %1773 = vmatprep.subr.bf16.mxu1 %v2042_v0 }
 0x355   : > { %1774 = vmatpush3.bf16.msra.mxu1 %v1938_v61 }
 0x356   : > { %1775 = vmatprep.subr.bf16.mxu1 %v2042_v0 }
 0x359   : > { %1776 = vmatpush3.bf16.msra.mxu1 %v1939_v62 }
 0x35a   : > { %1777 = vmatprep.subr.bf16.mxu1 %v2042_v0 }
 0x35d   : > { %1778 = vmatpush3.bf16.msra.mxu1 %v1940_v63  ;;  %v1949_v63 = vld [vmem:[#allocation2 + $0xb0] sm:$0xff]  }
 0x35e   : > { %1779 = vmatprep.subr.bf16.mxu1 %v2042_v0  ;;  %1813 = vmatpush3.bf16.msra.mxu0 %v1949_v63  ;;  %v1956_v63 = vld [vmem:[#allocation2 + $0xe8] sm:$0xff]  }
 0x35f   : > { %1814 = vmatprep.subr.bf16.mxu0 %v2042_v0 }
 0x361   : > { %1780 = vmatpush3.bf16.msra.mxu1 %v1941_v1  ;;  %v1950_v1 = vld [vmem:[#allocation2 + $0xb8] sm:$0xff]  }
 0x362   : > { %1781 = vmatprep.subr.bf16.mxu1 %v2042_v0  ;;  %1815 = vmatpush3.bf16.msra.mxu0 %v1950_v1  ;;  %v1957_v1 = vld [vmem:[#allocation2 + $0xf0] sm:$0xff]  }
 0x363   : > { %1860 = vmatprep.subr.bf16.mxu0 %v2042_v0 }
 0x365   : > { %1782 = vmatpush3.bf16.msra.mxu1 %v1942_v2  ;;  %v1628_v2 = vld [vmem:[%s2286_s4 + $0x1] ss:$0 sm:$0xff] }
 0x366   : > { %1889 = vmatprep.subr.bf16.mxu1 %v2045_v13 }
 0x41b   : > { %v538_v5 = vpop.f32.mrb[4].mxu1 }
 0x41c   : > { %v539_v6 = vadd.f32 %v1616_v4, %v538_v5  ;;  %v1765_v7 = vpop.f32.mrb[5].mxu1 }
 0x41d   : > { %v541_v8 = vpop.f32.mrb[6].mxu1 }
 0x41e   : > { %v542_v9 = vadd.f32 %v1616_v4, %v541_v8  ;;  %v1766_v10 = vpop.f32.mrb[7].mxu1  ;;  %v545_v11 = vmax.f32 %v539_v6, 0.0 }
 0x420   : > { %v546_v12 = vmax.f32 %v542_v9, 0.0 }
 0x422   : > { %v564_v14 = vpack.c.bf16 %v546_v12, %v545_v11  ;;  %v1638_v12 = vld [vmem:[%s2285_s3 + $0x4] sm:$0x3] }
 0x424   : > { %1784 = vmatmul.mubr.bf16.vlgmr.msra.gmra.mrb[8].mxu1 %v564_v14  ;;  %v1016_v14 = vrot.slane %v1638_v12, %v2153_v24 }
 0x425   : > { %1791 = vmatprep.mubr.msk.f32.mxu1 %vm2043_vm0, %v2042_v0 }
 0x4f7   : > { %v647_v15 = vpop.f32.mrb[8].mxu1 }
 0x4f8   : > { %731 = vperm.xlu1 %1925, %v647_v15   ;;  %v1785_v16 = vpop.f32.mrb[9].mxu1 }
 0x4f9   : > { %v650_v17 = vpop.f32.mrb[10].mxu1 }
 0x4fa   : > { %v1890_v18 = vpack.c.bf16 %v650_v17, %v647_v15  ;;  %v1786_v19 = vpop.f32.mrb[11].mxu1 }
 0x4fc   : > { %736 = vperm.xlu1 %1925, %v650_v17   ;;  %1891 = vmatpush3.bf16.xpose.msra.mxu1 %v1890_v18 }
 0x4fd   : > { %1794 = vmatprep.subr.bf16.mxu1 %v2042_v0 }
 0x503   : > { %1792 = vmatmul.mubr.f32.vlgmr.msra.gmra.mrb[2].mxu1 %v657_v21 }
 0x504   : > { %1795 = vmatpush3.bf16.msra.mxu1 %v1890_v18  ;;  %1796 = vmatprep.mubr.msk.bf16.mxu1 %vm2043_vm0, %v2042_v0 }
 0x505   : > { %1892 = vmatprep.subr.bf16.mxu1 %v2045_v13 }
 0x577   : > { %v732_v22 = vpop.permute.xlu1 %731 }
 0x57b   : > { %v737_v27 = vpop.permute.xlu1 %736 }
 0x5d6   : > { %v725_v23 = vpop.f32.mrb[2].mxu1 }
 0x5d7   : > { %v742_v25 = vrot.slane %v725_v23, %v2153_v24  ;;  %v1793_v26 = vpop.f32.mrb[3].mxu1 }
 0x5d9   : > { %v743_v28 = vadd.f32 %v742_v25, %v732_v22  ;;  %v744_v29 = vadd.f32 %v742_v25, %v737_v27  ;;  %v941_v22 = vrot.slane %v1638_v12, 1 }
 0x5db   : > { %v747_v30 = vmul.f32 0.2, %v743_v28  ;;  %v748_v32 = vmul.f32 0.2, %v744_v29  ;;  %vm746_vm4 = vcmp.gt.f32.partialorder %v744_v29, 0.0  ;;  %vm745_vm5 = vcmp.gt.f32.partialorder %v743_v28, 0.0 }
 0x5dd   : > { %v750_v33 = vsel %vm746_vm4, %v744_v29, %v748_v32  ;;  %v749_v34 = vsel %vm745_vm5, %v743_v28, %v747_v30 }
 0x5de   : > { %v752_v36 = vadd.f32 %v750_v33, %v2162_v35  ;;  %v751_v37 = vadd.f32 %v749_v34, %v2160_v31 }
 0x5e0   : > { %v756_v38 = vsel %vm469_vm3, %v752_v36, -inf  ;;  %v753_v39 = vsel %vm469_vm3, %v751_v37, -inf }
 0x5e1   : > { %757 = vmax.xlane.f32.xlu0 %v756_v38  ;;  %754 = vmax.xlane.f32.xlu1 %v753_v39 }
 0x66e   : > { %v758_v40 = vpop.xlane.xlu0 %757  ;;  %v755_v41 = vpop.xlane.xlu1 %754 }
 0x66f   : > { %v760_v42 = vsub.f32 %v752_v36, %v758_v40  ;;  %v759_v43 = vsub.f32 %v751_v37, %v755_v41 }
 0x671   : > { %v761_v44 = vmul.f32 1.442695, %v759_v43  ;;  %v763_v45 = vmul.f32 1.442695, %v760_v42 }
 0x673   : > { %1975 = vpow2.f32 %v761_v44 }
 0x674   : > { %1977 = vpow2.f32 %v763_v45 }
 0x67d   : > { %v1976_v46 = vpop.eup %1975 }
 0x67e   : > { %v765_v47 = vsel %vm469_vm3, %v1976_v46, 0.0  ;;  %v1978_v48 = vpop.eup %1977 }
 0x67f   : > { %766 = vadd.xlane.f32.xlu0 %v765_v47  ;;  %v768_v49 = vsel %vm469_vm3, %v1978_v48, 0.0 }
 0x683   : > { %769 = vadd.xlane.f32.xlu0 %v768_v49 }
 0x70c   : > { %v767_v56 = vpop.xlane.xlu0 %766 }
 0x70d   : > { %1979 = vrcp.f32 %v767_v56 }
 0x710   : > { %v770_v57 = vpop.xlane.xlu0 %769 }
 0x711   : > { %1981 = vrcp.f32 %v770_v57  ;;  %v1951_v57 = vld [vmem:[#allocation2 + $0xc0] sm:$0xff]  }
 0x717   : > { %v1980_v58 = vpop.eup %1979 }
 0x718   : > { %v773_v60 = vmul.f32 %v1980_v58, %v1976_v46 }
 0x71b   : > { %v1982_v59 = vpop.eup %1981 }
 0x71c   : > { %v774_v61 = vmul.f32 %v1982_v59, %v1978_v48  ;;  %v1952_v59 = vld [vmem:[#allocation2 + $0xc8] sm:$0xff]  }
 0x71e   : > { %v775_v62 = vpack.c.bf16 %v774_v61, %v773_v60  ;;  %v1953_v60 = vld [vmem:[#allocation2 + $0xd0] sm:$0xff]   ;;  %v1954_v61 = vld [vmem:[#allocation2 + $0xd8] sm:$0xff]  }
 0x720   : > { %1797 = vmatmul.mubr.msk.bf16.vlgmr.msra.gmra.mrb[12].mxu1 %vm469_vm3, %v775_v62  ;;  %v1955_v62 = vld [vmem:[#allocation2 + $0xe0] sm:$0xff]  }
 0x721   : > { %1824 = vmatprep.mubr.msk.f32.mxu1 %vm2043_vm0, %v2042_v0 }
 0x7f3   : > { %v822_v3 = vpop.f32.mrb[12].mxu1 }
 0x7f4   : > { %v823_v4 = vadd.f32 %v1628_v2, %v822_v3  ;;  %v1798_v5 = vpop.f32.mrb[13].mxu1  ;;  %v1640_v3 = vld [vmem:[%s2286_s4 + $0x2] ss:$0 sm:$0xff] }
 0x7f5   : > { %v825_v6 = vpop.f32.mrb[14].mxu1 }
 0x7f6   : > { %v826_v7 = vadd.f32 %v1628_v2, %v825_v6  ;;  %v1799_v8 = vpop.f32.mrb[15].mxu1  ;;  %v829_v9 = vmax.f32 %v823_v4, 0.0  ;;  %v1958_v2 = vld [vmem:[#allocation2 + $0xf8] sm:$0xff]  }
 0x7f8   : > { %v830_v10 = vmax.f32 %v826_v7, 0.0 }
 0x7fa   : > { %v848_v11 = vpack.c.bf16 %v830_v10, %v829_v9 }
 0x7fc   : > { %1817 = vmatmul.mubr.bf16.vlgmr.msra.gmra.mrb[4].mxu0 %v848_v11 }
 0x7fd   : > { %1862 = vmatprep.mubr.msk.bf16.mxu0 %vm2043_vm0, %v2042_v0 }
 0x8cf   : > { %v931_v15 = vpop.f32.mrb[4].mxu0 }
 0x8d0   : > { %v1818_v16 = vpop.f32.mrb[5].mxu0  ;;  %v1017_v17 = vmul.f32 %v1016_v14, %v931_v15 }
 0x8d1   : > { %v934_v18 = vpop.f32.mrb[6].mxu0 }
 0x8d2   : > { %v1893_v19 = vpack.c.bf16 %v934_v18, %v931_v15  ;;  %1019 = vadd.xlane.f32.xlu0 %v1017_v17  ;;  %v1819_v20 = vpop.f32.mrb[7].mxu0  ;;  %v1018_v21 = vmul.f32 %v1016_v14, %v934_v18 }
 0x8d4   : > { %1894 = vmatpush3.bf16.xpose.msra.mxu1 %v1893_v19 }
 0x8d5   : > { %1827 = vmatprep.subr.bf16.mxu1 %v2042_v0 }
 0x8d6   : > { %1021 = vadd.xlane.f32.xlu0 %v1018_v21 }
 0x8db   : > { %1825 = vmatmul.mubr.f32.vlgmr.msra.gmra.mrb[16].mxu1 %v941_v22 }
 0x8dc   : > { %1828 = vmatpush3.bf16.msra.mxu1 %v1893_v19  ;;  %1829 = vmatprep.mubr.msk.bf16.mxu1 %vm2043_vm0, %v2042_v0 }
 0x8dd   : > { %1833 = vmatprep.subr.bf16.mxu1 %v2042_v0 }
 0x95f   : > { %v1020_v23 = vpop.xlane.xlu0 %1019 }
 0x963   : > { %v1022_v28 = vpop.xlane.xlu0 %1021 }
 0x9ae   : > { %v1009_v25 = vpop.f32.mrb[16].mxu1 }
 0x9af   : > { %v1026_v26 = vrot.slane %v1009_v25, %v2153_v24  ;;  %v1826_v27 = vpop.f32.mrb[17].mxu1 }
 0x9b1   : > { %v1027_v29 = vadd.f32 %v1026_v26, %v1020_v23  ;;  %v1028_v30 = vadd.f32 %v1026_v26, %v1022_v28 }
 0x9b3   : > { %v1031_v32 = vmul.f32 0.2, %v1027_v29  ;;  %v1032_v33 = vmul.f32 0.2, %v1028_v30  ;;  %vm1029_vm6 = vcmp.gt.f32.partialorder %v1027_v29, 0.0  ;;  %vm1030_vm7 = vcmp.gt.f32.partialorder %v1028_v30, 0.0 }
 0x9b5   : > { %v1033_v34 = vsel %vm1029_vm6, %v1027_v29, %v1031_v32  ;;  %v1034_v36 = vsel %vm1030_vm7, %v1028_v30, %v1032_v33 }
 0x9b6   : > { %v1035_v37 = vadd.f32 %v1033_v34, %v2160_v31  ;;  %v1036_v39 = vadd.f32 %v1034_v36, %v2162_v35 }
 0x9b8   : > { %v1037_v38 = vsel %vm469_vm3, %v1035_v37, -inf  ;;  %v1040_v40 = vsel %vm469_vm3, %v1036_v39, -inf }
 0x9b9   : > { %1038 = vmax.xlane.f32.xlu0 %v1037_v38 }
 0x9bd   : > { %1041 = vmax.xlane.f32.xlu0 %v1040_v40 }
 0xa46   : > { %v1039_v41 = vpop.xlane.xlu0 %1038 }
 0xa47   : > { %v1043_v42 = vsub.f32 %v1035_v37, %v1039_v41 }
 0xa49   : > { %v1045_v43 = vmul.f32 1.442695, %v1043_v42 }
 0xa4a   : > { %v1042_v44 = vpop.xlane.xlu0 %1041 }
 0xa4b   : > { %1983 = vpow2.f32 %v1045_v43  ;;  %v1044_v45 = vsub.f32 %v1036_v39, %v1042_v44 }
 0xa4d   : > { %v1047_v46 = vmul.f32 1.442695, %v1044_v45 }
 0xa4f   : > { %1985 = vpow2.f32 %v1047_v46 }
 0xa55   : > { %v1984_v47 = vpop.eup %1983 }
 0xa56   : > { %v1049_v48 = vsel %vm469_vm3, %v1984_v47, 0.0 }
 0xa57   : > { %1050 = vadd.xlane.f32.xlu0 %v1049_v48 }
 0xa59   : > { %v1986_v49 = vpop.eup %1985 }
 0xa5a   : > { %v1052_v50 = vsel %vm469_vm3, %v1986_v49, 0.0 }
 0xa5b   : > { %1053 = vadd.xlane.f32.xlu1 %v1052_v50 }
 0xae4   : > { %v1051_v51 = vpop.xlane.xlu0 %1050 }
 0xae5   : > { %1987 = vrcp.f32 %v1051_v51 }
 0xae8   : > { %v1054_v52 = vpop.xlane.xlu1 %1053 }
 0xae9   : > { %1989 = vrcp.f32 %v1054_v52 }
 0xaef   : > { %v1988_v53 = vpop.eup %1987 }
 0xaf0   : > { %v1057_v55 = vmul.f32 %v1988_v53, %v1984_v47 }
 0xaf3   : > { %v1990_v54 = vpop.eup %1989 }
 0xaf4   : > { %v1058_v56 = vmul.f32 %v1990_v54, %v1986_v49  ;;  %v1959_v54 = vld [vmem:[#allocation2 + $0x100] sm:$0xff]  }
 0xaf6   : > { %v1059_v58 = vpack.c.bf16 %v1058_v56, %v1057_v55  ;;  %v1960_v56 = vld [vmem:[#allocation2 + $0x108] sm:$0xff]  }
 0xaf8   : > { %1830 = vmatmul.mubr.msk.bf16.vlgmr.msra.gmra.mrb[20].mxu1 %vm469_vm3, %v1059_v58  ;;  %v1962_v58 = vld [vmem:[#allocation2 + $0x118] sm:$0xff]  }
 0xaf9   : > { %1834 = vmatpush3.bf16.msra.mxu1 %v1951_v57  ;;  %1849 = vmatprep.mubr.msk.bf16.mxu1 %vm2043_vm0, %v2042_v0  ;;  %v1961_v57 = vld [vmem:[#allocation2 + $0x110] sm:$0xff]  }
 0xafa   : > { %1835 = vmatprep.subr.bf16.mxu1 %v2042_v0 }
 0xafd   : > { %1836 = vmatpush3.bf16.msra.mxu1 %v1952_v59  ;;  %v1963_v59 = vld [vmem:[#allocation2 + $0x120] sm:$0xff]  }
 0xafe   : > { %1837 = vmatprep.subr.bf16.mxu1 %v2042_v0 }
 0xb01   : > { %1838 = vmatpush3.bf16.msra.mxu1 %v1953_v60  ;;  %v1964_v60 = vld [vmem:[#allocation2 + $0x128] sm:$0xff]  }
 0xb02   : > { %1839 = vmatprep.subr.bf16.mxu1 %v2042_v0 }
 0xb05   : > { %1840 = vmatpush3.bf16.msra.mxu1 %v1954_v61  ;;  %v1965_v61 = vld [vmem:[#allocation2 + $0x130] sm:$0xff]  }
 0xb06   : > { %1841 = vmatprep.subr.bf16.mxu1 %v2042_v0 }
 0xb09   : > { %1842 = vmatpush3.bf16.msra.mxu1 %v1955_v62  ;;  %v1966_v62 = vld [vmem:[#allocation2 + $0x138] sm:$0xff]  }
 0xb0a   : > { %1843 = vmatprep.subr.bf16.mxu1 %v2042_v0 }
 0xb0d   : > { %1844 = vmatpush3.bf16.msra.mxu1 %v1956_v63  ;;  %v1652_v63 = vld [vmem:[%s2286_s4 + $0x3] ss:$0 sm:$0xff] }
 0xb0e   : > { %1845 = vmatprep.subr.bf16.mxu1 %v2042_v0 }
 0xb11   : > { %1846 = vmatpush3.bf16.msra.mxu1 %v1957_v1 }
 0xb12   : > { %1847 = vmatprep.subr.bf16.mxu1 %v2042_v0 }
 0xb15   : > { %1848 = vmatpush3.bf16.msra.mxu1 %v1958_v2 }
 0xb16   : > { %1895 = vmatprep.subr.bf16.mxu1 %v2045_v13  ;;  %v1650_v13 = vld [vmem:[%s2285_s3 + $0x6] sm:$0x3] }
 0xb17   : > { %v1300_v14 = vrot.slane %v1650_v13, %v2153_v24  ;;  %v1225_v22 = vrot.slane %v1650_v13, 1 }
 0xbcb   : > { %v1106_v4 = vpop.f32.mrb[20].mxu1 }
 0xbcc   : > { %v1107_v5 = vadd.f32 %v1640_v3, %v1106_v4  ;;  %v1831_v6 = vpop.f32.mrb[21].mxu1 }
 0xbcd   : > { %v1109_v7 = vpop.f32.mrb[22].mxu1 }
 0xbce   : > { %v1110_v8 = vadd.f32 %v1640_v3, %v1109_v7  ;;  %v1832_v9 = vpop.f32.mrb[23].mxu1  ;;  %v1113_v10 = vmax.f32 %v1107_v5, 0.0 }
 0xbd0   : > { %v1114_v11 = vmax.f32 %v1110_v8, 0.0 }
 0xbd2   : > { %v1132_v12 = vpack.c.bf16 %v1114_v11, %v1113_v10 }
 0xbd4   : > { %1850 = vmatmul.mubr.bf16.vlgmr.msra.gmra.mrb[24].mxu1 %v1132_v12 }
 0xbd5   : > { %1857 = vmatprep.mubr.msk.f32.mxu1 %vm2043_vm0, %v2042_v0 }
 0xca7   : > { %v1215_v15 = vpop.f32.mrb[24].mxu1 }
 0xca8   : > { %v1851_v16 = vpop.f32.mrb[25].mxu1  ;;  %v1301_v17 = vmul.f32 %v1300_v14, %v1215_v15 }
 0xca9   : > { %v1218_v18 = vpop.f32.mrb[26].mxu1 }
 0xcaa   : > { %v1896_v19 = vpack.c.bf16 %v1218_v18, %v1215_v15  ;;  %1303 = vadd.xlane.f32.xlu0 %v1301_v17  ;;  %v1852_v20 = vpop.f32.mrb[27].mxu1  ;;  %v1302_v21 = vmul.f32 %v1300_v14, %v1218_v18 }
 0xcac   : > { %1305 = vadd.xlane.f32.xlu1 %v1302_v21  ;;  %1897 = vmatpush3.bf16.xpose.msra.mxu1 %v1896_v19 }
 0xcad   : > { %1861 = vmatpush3.bf16.msra.mxu0 %v1896_v19 }
 0xcae   : > { %1866 = vmatprep.subr.bf16.mxu0 %v2042_v0 }
 0xcb3   : > { %1858 = vmatmul.mubr.f32.vlgmr.msra.gmra.mrb[18].mxu1 %v1225_v22 }
 0xd37   : > { %v1304_v27 = vpop.xlane.xlu0 %1303 }
 0xd39   : > { %v1306_v28 = vpop.xlane.xlu1 %1305 }
 0xd86   : > { %v1293_v23 = vpop.f32.mrb[18].mxu1 }
 0xd87   : > { %v1310_v25 = vrot.slane %v1293_v23, %v2153_v24  ;;  %v1859_v26 = vpop.f32.mrb[19].mxu1 }
 0xd89   : > { %v1311_v29 = vadd.f32 %v1310_v25, %v1304_v27  ;;  %v1312_v30 = vadd.f32 %v1310_v25, %v1306_v28 }
 0xd8b   : > { %v1315_v32 = vmul.f32 0.2, %v1311_v29  ;;  %v1316_v33 = vmul.f32 0.2, %v1312_v30  ;;  %vm1314_vm8 = vcmp.gt.f32.partialorder %v1312_v30, 0.0  ;;  %vm1313_vm9 = vcmp.gt.f32.partialorder %v1311_v29, 0.0 }
 0xd8d   : > { %v1318_v34 = vsel %vm1314_vm8, %v1312_v30, %v1316_v33  ;;  %v1317_v36 = vsel %vm1313_vm9, %v1311_v29, %v1315_v32 }
 0xd8e   : > { %v1320_v37 = vadd.f32 %v1318_v34, %v2162_v35  ;;  %v1319_v38 = vadd.f32 %v1317_v36, %v2160_v31 }
 0xd90   : > { %v1324_v39 = vsel %vm469_vm3, %v1320_v37, -inf  ;;  %v1321_v40 = vsel %vm469_vm3, %v1319_v38, -inf }
 0xd91   : > { %1325 = vmax.xlane.f32.xlu1 %v1324_v39  ;;  %1322 = vmax.xlane.f32.xlu0 %v1321_v40 }
 0xe1e   : > { %v1326_v24 = vpop.xlane.xlu1 %1325  ;;  %v1323_v41 = vpop.xlane.xlu0 %1322 }
 0xe1f   : > { %v1328_v42 = vsub.f32 %v1320_v37, %v1326_v24  ;;  %v1327_v43 = vsub.f32 %v1319_v38, %v1323_v41 }
 0xe21   : > { %v1331_v44 = vmul.f32 1.442695, %v1328_v42  ;;  %v1329_v45 = vmul.f32 1.442695, %v1327_v43 }
 0xe23   : > { %1991 = vpow2.f32 %v1331_v44 }
 0xe24   : > { %1993 = vpow2.f32 %v1329_v45 }
 0xe2d   : > { %v1992_v46 = vpop.eup %1991 }
 0xe2e   : > { %v1994_v47 = vpop.eup %1993  ;;  %v1336_v35 = vsel %vm469_vm3, %v1992_v46, 0.0 }
 0xe2f   : > { %1337 = vadd.xlane.f32.xlu1 %v1336_v35  ;;  %v1333_v31 = vsel %vm469_vm3, %v1994_v47, 0.0 }
 0xe30   : > { %1334 = vadd.xlane.f32.xlu0 %v1333_v31 }
 0xebc   : > { %v1338_v48 = vpop.xlane.xlu1 %1337 }
 0xebd   : > { %1995 = vrcp.f32 %v1338_v48  ;;  %v1335_v49 = vpop.xlane.xlu0 %1334 }
 0xebe   : > { %1997 = vrcp.f32 %v1335_v49 }
 0xec7   : > { %v1996_v50 = vpop.eup %1995 }
 0xec8   : > { %v1998_v51 = vpop.eup %1997  ;;  %v1342_v52 = vmul.f32 %v1996_v50, %v1992_v46 }
 0xec9   : > { %v1341_v53 = vmul.f32 %v1998_v51, %v1994_v47 }
 0xecb   : > { %v1343_v55 = vpack.c.bf16 %v1342_v52, %v1341_v53 }
 0xecd   : > { %1863 = vmatmul.mubr.msk.bf16.vlgmr.msra.gmra.mrb[8].mxu0 %vm469_vm3, %v1343_v55 }
 0xece   : > { %1867 = vmatpush3.bf16.msra.mxu0 %v1959_v54  ;;  %1882 = vmatprep.mubr.msk.bf16.mxu0 %vm2043_vm0, %v2042_v0 }
 0xecf   : > { %1868 = vmatprep.subr.bf16.mxu0 %v2042_v0 }
 0xed2   : > { %1869 = vmatpush3.bf16.msra.mxu0 %v1960_v56 }
 0xed3   : > { %1870 = vmatprep.subr.bf16.mxu0 %v2042_v0 }
 0xed6   : > { %1871 = vmatpush3.bf16.msra.mxu0 %v1961_v57 }
 0xed7   : > { %1872 = vmatprep.subr.bf16.mxu0 %v2042_v0 }
 0xeda   : > { %1873 = vmatpush3.bf16.msra.mxu0 %v1962_v58 }
 0xedb   : > { %1874 = vmatprep.subr.bf16.mxu0 %v2042_v0 }
 0xede   : > { %1875 = vmatpush3.bf16.msra.mxu0 %v1963_v59 }
 0xedf   : > { %1876 = vmatprep.subr.bf16.mxu0 %v2042_v0 }
 0xee2   : > { %1877 = vmatpush3.bf16.msra.mxu0 %v1964_v60 }
 0xee3   : > { %1878 = vmatprep.subr.bf16.mxu0 %v2042_v0 }
 0xee6   : > { %1879 = vmatpush3.bf16.msra.mxu0 %v1965_v61 }
 0xee7   : > { %1880 = vmatprep.subr.bf16.mxu0 %v2042_v0  ;;  %v1655_v0 = vld [vmem:[%s2286_s4 + $0x4] ss:$0 sm:$0xff] }
 0xeea   : > { %1881 = vmatpush3.bf16.msra.mxu0 %v1966_v62 }
 0xfa0   : > { %v1390_v1 = vpop.f32.mrb[8].mxu0 }
 0xfa1   : > { %v1391_v2 = vadd.f32 %v1652_v63, %v1390_v1  ;;  %v1864_v3 = vpop.f32.mrb[9].mxu0 }
 0xfa2   : > { %v1393_v4 = vpop.f32.mrb[10].mxu0 }
 0xfa3   : > { %v1394_v5 = vadd.f32 %v1652_v63, %v1393_v4  ;;  %v1865_v6 = vpop.f32.mrb[11].mxu0  ;;  %v1397_v7 = vmax.f32 %v1391_v2, 0.0 }
 0xfa5   : > { %v1398_v8 = vmax.f32 %v1394_v5, 0.0 }
 0xfa7   : > { %v1399_v9 = vpack.c.bf16 %v1398_v8, %v1397_v7 }
 0xfa9   : > { %1883 = vmatmul.mubr.bf16.vlgmr.msra.gmra.mrb[12].mxu0 %v1399_v9 }
0x107c   : > { %v1507_v10 = vpop.f32.mrb[12].mxu0 }
0x107d   : > { %v1508_v11 = vadd.f32 %v1655_v0, %v1507_v10  ;;  %v1884_v12 = vpop.f32.mrb[13].mxu0 }
0x107e   : > { %v1510_v13 = vpop.f32.mrb[14].mxu0 }
0x107f   : > { %1514 = vst [vmem:[%s259_s15] sm:$0xff] %v1508_v11  ;;  %v1511_v14 = vadd.f32 %v1655_v0, %v1510_v13  ;;  %v1885_v15 = vpop.f32.mrb[15].mxu0 }
0x1081   : > { %1515 = vst [vmem:[%s259_s15 + $0x8] sm:$0xff] %v1511_v14 }
0x1082 PF: > { %s16_s18 = sadd.s32 1, %s2037_s18  }
0x1083   : > { %p13_p3 = scmp.ge.s32.totalorder %s16_s18, 6  }
0x1085   :  { %15 = sbr.rel (!%p13_p3) target bundleno = 1 (0x1), region = 89 }
0x108c   :  { %1537 = vsyncpa [#allocation3], 1 }
0x108d   :  { %1539 = vsyncpa [#allocation3 + $0x1], 1 }

</bundles_post_ra>
